<compile_context>
chip_gen: v7x
topology: tpu7x:2x2x1
jax: 0.10.0
libtpu: 0.0.40
codegen_flags: <defaults>
</compile_context>

<pallas_src>
import jax
import jax.numpy as jnp
import numpy as np
from jax.experimental import pallas as pl
from jax.experimental.pallas import tpu as pltpu

NUM_CLASSES = 14
N_BINS = 15
NB_PAD = 16              # bins padded to 16 sublanes
STATS_COLS = 8           # lane columns: [count, sum(conf), sum(acc), 0, ...]
MAX_TILE_HW = 32 * 1024  # pixels (lanes) per grid step, multiple of 128


def _make_stats_kernel(n_classes, tile_hw, hw, tiles_per_split, need_mask):
    """Per-tile kernel factory. All closure args are static python ints/bools."""

    def kernel(logits_ref, target_ref, stats_ref):
        s = pl.program_id(1)   # pixel-split index (v7x core split)
        j = pl.program_id(2)   # tile index within the split (reduction axis)

        @pl.when(j == 0)
        def _init():
            stats_ref[...] = jnp.zeros(stats_ref.shape, stats_ref.dtype)

        x = logits_ref[0].astype(jnp.float32)    # (C, T): classes on sublanes
        t = target_ref[0].astype(jnp.float32)    # (C, T)

        # softmax statistics without materializing probs:
        #   conf = max softmax prob = 1 / sum(exp(x - xmax)); pred = argmax(x)
        xmax = jnp.max(x, axis=0, keepdims=True)                    # (1, T)
        denom = jnp.sum(jnp.exp(x - xmax), axis=0, keepdims=True)   # (1, T)
        conf = 1.0 / denom    # exact divide (conf feeds the bin index)

        cls_iota = jax.lax.broadcasted_iota(jnp.int32, x.shape, 0)
        pred = jnp.min(jnp.where(x == xmax, cls_iota, n_classes),
                       axis=0, keepdims=True)                       # (1, T)

        # fused target argmax (first max index == torch.argmax semantics)
        tmax = jnp.max(t, axis=0, keepdims=True)
        lab = jnp.min(jnp.where(t == tmax, cls_iota, n_classes),
                      axis=0, keepdims=True)                        # (1, T)

        acc = (pred == lab).astype(jnp.float32)                     # (1, T)

        if need_mask:  # only compiled in when the padded grid overshoots HW
            g = s * tiles_per_split + j
            lane = jax.lax.broadcasted_iota(jnp.int32, conf.shape, 1)
            valid = (g * tile_hw + lane) < hw
            ones = valid.astype(jnp.float32)
            conf = jnp.where(valid, conf, 0.0)
            acc = jnp.where(valid, acc, 0.0)

        # torchmetrics-style binning: clip(floor(conf * 15), 0, 14)
        bin_idx = jnp.clip(jnp.floor(conf * N_BINS), 0.0,
                           N_BINS - 1).astype(jnp.int32)            # (1, T)

        # bin membership, bins on sublanes: (16, T).  Pure VPU + small
        # cross-lane reduce — no MXU, no onehot transpose.
        bin_iota = jax.lax.broadcasted_iota(
            jnp.int32, (NB_PAD,) + conf.shape[1:], 0)
        bin_hit = bin_iota == bin_idx                               # (16, T)

        if need_mask:
            cnt = jnp.sum(jnp.where(bin_hit, ones, 0.0), axis=1, keepdims=True)
        else:
            cnt = jnp.sum(bin_hit.astype(jnp.float32), axis=1, keepdims=True)
        csum = jnp.sum(jnp.where(bin_hit, conf, 0.0), axis=1, keepdims=True)
        asum = jnp.sum(jnp.where(bin_hit, acc, 0.0), axis=1, keepdims=True)

        # place the three (16,1) columns into the (16, 8) stats slab
        col = jax.lax.broadcasted_iota(jnp.int32, (NB_PAD, STATS_COLS), 1)
        upd = (jnp.where(col == 0, cnt, 0.0)
               + jnp.where(col == 1, csum, 0.0)
               + jnp.where(col == 2, asum, 0.0))                    # (16, 8)

        stats_ref[...] += upd   # output block resident across the j axis

    return kernel


@jax.jit
def _ece_device(input_nchw, target_nchw):
    bs, c, h, w = input_nchw.shape
    assert c == NUM_CLASSES
    hw = h * w

    # NCHW-native views: class dim on sublanes, pixels dense on the lane axis.
    # No dtype cast here: bf16 logits/targets are accepted and upcast in-register.
    logits = input_nchw.reshape(bs, c, hw)
    target = target_nchw.reshape(bs, c, hw)

    tile_hw = min(MAX_TILE_HW, ((hw + 127) // 128) * 128)
    n_tiles = (hw + tile_hw - 1) // tile_hw

    # v7x core split over pixels (extra "parallel" axis); harmless outer loop
    # on single-TC v5e/v6e.
    n_split = 2 if n_tiles >= 2 else 1
    tiles_per_split = (n_tiles + n_split - 1) // n_split
    padded_grid = (n_split * tiles_per_split) != n_tiles
    need_mask = (n_split * tiles_per_split * tile_hw) != hw

    def pix_map(b, s, j):
        g = s * tiles_per_split + j
        if padded_grid:
            g = jnp.minimum(g, n_tiles - 1)   # clamp; masked to zero in-kernel
        return (b, 0, g)

    stats = pl.pallas_call(
        _make_stats_kernel(c, tile_hw, hw, tiles_per_split, need_mask),
        out_shape=jax.ShapeDtypeStruct((bs, n_split, NB_PAD, STATS_COLS),
                                       jnp.float32),
        grid=(bs, n_split, tiles_per_split),
        in_specs=[
            pl.BlockSpec((1, c, tile_hw), pix_map),
            pl.BlockSpec((1, c, tile_hw), pix_map),
        ],
        out_specs=pl.BlockSpec((1, 1, NB_PAD, STATS_COLS),
                               lambda b, s, j: (b, s, 0, 0)),
        compiler_params=pltpu.CompilerParams(
            dimension_semantics=("parallel", "parallel", "arbitrary"),
            vmem_limit_bytes=32 * 1024 * 1024),
    )(logits, target)

    # Tiny finalize in plain JAX: combine per-(batch, split) slabs + ECE formula.
    tot = jnp.sum(stats, axis=(0, 1))            # (16, 8)
    cnt = tot[:N_BINS, 0]
    csum = tot[:N_BINS, 1]
    asum = tot[:N_BINS, 2]
    safe = jnp.maximum(cnt, 1.0)                 # nan_to_num(0/0) -> 0
    prop = cnt / jnp.sum(cnt)
    return jnp.sum(jnp.abs(asum / safe - csum / safe) * prop)


def ece_metric(input_nchw, target_nchw, mask=None, return_track=True):
    """Equivalent of ECE_metric.forward(input, target); unmasked path."""
    if mask is not None:
        # TODO(synk): masked path (kwargs['mask']) needs data-dependent
        # compaction of valid pixels; only the unmasked branch is implemented.
        raise NotImplementedError("masked ECE path not implemented")
    metric = _ece_device(input_nchw, target_nchw)
    # The numpy track value forces a host sync; keep it optional.
    metric_track = np.asarray(metric) if return_track else None
    return metric, metric_track


def _ece_reference(input_nchw, target_nchw, n_bins=N_BINS):
    """Pure-JAX reference (same math as torchmetrics MulticlassCalibrationError, l1)."""
    bs, c = input_nchw.shape[:2]
    probs = jax.nn.softmax(input_nchw.astype(jnp.float32), axis=1)
    p = jnp.transpose(probs.reshape(bs, c, -1), (0, 2, 1)).reshape(-1, c)
    t = jnp.transpose(target_nchw.reshape(bs, c, -1), (0, 2, 1)).reshape(-1, c)
    lab = jnp.argmax(t, axis=-1)
    conf = jnp.max(p, axis=-1)
    pred = jnp.argmax(p, axis=-1)
    acc = (pred == lab).astype(jnp.float32)
    b = jnp.clip(jnp.floor(conf * n_bins), 0, n_bins - 1).astype(jnp.int32)
    cnt = jnp.zeros(n_bins).at[b].add(1.0)
    cs = jnp.zeros(n_bins).at[b].add(conf)
    asum = jnp.zeros(n_bins).at[b].add(acc)
    safe = jnp.maximum(cnt, 1.0)
    return jnp.sum(jnp.abs(asum / safe - cs / safe) * (cnt / cnt.sum()))


if __name__ == "__main__":
    key = jax.random.PRNGKey(0)
    k1, k2 = jax.random.split(key)

    bs, C, H, W = 2, NUM_CLASSES, 16, 16
    logits = jax.random.normal(k1, (bs, C, H, W), dtype=jnp.float32)
    labels = jax.random.randint(k2, (bs, H, W), 0, C)
    # one-hot target in NCHW layout (what argmax(target, dim=1) expects)
    target = jnp.transpose(jax.nn.one_hot(labels, C, dtype=jnp.float32),
                           (0, 3, 1, 2))

    metric, metric_track = ece_metric(logits, target)
    metric = jax.block_until_ready(metric)

    ref = jax.block_until_ready(_ece_reference(logits, target))
    assert np.abs(np.asarray(metric) - np.asarray(ref)) < 1e-4, (metric, ref)

    print("KERNEL_OK")
</pallas_src>

<mosaic_0001>
module attributes {stable_mosaic.version = 11 : i64} {
  func.func @kernel(%arg0: i32, %arg1: i32, %arg2: i32, %arg3: memref<1x14x256xf32, #tpu.memory_space<vmem>>, %arg4: memref<1x14x256xf32, #tpu.memory_space<vmem>>, %arg5: memref<1x1x16x8xf32, #tpu.memory_space<vmem>>) attributes {dimension_semantics = [#tpu.dimension_semantics<parallel>, #tpu.dimension_semantics<parallel>, #tpu.dimension_semantics<arbitrary>], iteration_bounds = array<i64: 2, 1, 1>, scalar_prefetch = 0 : i64, scratch_operands = 0 : i64, tpu.core_type = #tpu.core_type<tc>, window_params = [{transform_indices = @transform_0, window_bounds = array<i64: 1, 14, 256>}, {transform_indices = @transform_1, window_bounds = array<i64: 1, 14, 256>}, {transform_indices = @transform_2, window_bounds = array<i64: 1, 1, 16, 8>}]} {
    %c0_i32 = arith.constant 0 : i32
    %0 = arith.cmpi eq, %arg2, %c0_i32 : i32
    %1 = arith.extui %0 : i1 to i32
    %c0_i32_0 = arith.constant 0 : i32
    %2 = arith.cmpi ne, %1, %c0_i32_0 : i32
    scf.if %2 {
      %cst_32 = arith.constant 0.000000e+00 : f32
      %87 = vector.broadcast %cst_32 : f32 to vector<1x1x16x8xf32>
      %c0_33 = arith.constant 0 : index
      %c0_34 = arith.constant 0 : index
      %c0_35 = arith.constant 0 : index
      %c0_36 = arith.constant 0 : index
      %88 = vector.load %arg5[%c0_33, %c0_34, %c0_35, %c0_36] : memref<1x1x16x8xf32, #tpu.memory_space<vmem>>, vector<1x1x16x8xf32>
      tpu.vector_store %arg5[%c0_33, %c0_34, %c0_35, %c0_36], %87 {strides = array<i32>} : memref<1x1x16x8xf32, #tpu.memory_space<vmem>>, vector<1x1x16x8xf32>,
    } else {
    }
    %c0 = arith.constant 0 : index
    %c0_1 = arith.constant 0 : index
    %c0_2 = arith.constant 0 : index
    %3 = vector.load %arg3[%c0, %c0_1, %c0_2] : memref<1x14x256xf32, #tpu.memory_space<vmem>>, vector<1x14x256xf32>
    %4 = vector.shape_cast %3 : vector<1x14x256xf32> to vector<14x256xf32>
    %c0_3 = arith.constant 0 : index
    %c0_4 = arith.constant 0 : index
    %c0_5 = arith.constant 0 : index
    %5 = vector.load %arg4[%c0_3, %c0_4, %c0_5] : memref<1x14x256xf32, #tpu.memory_space<vmem>>, vector<1x14x256xf32>
    %6 = vector.shape_cast %5 : vector<1x14x256xf32> to vector<14x256xf32>
    %cst = arith.constant dense<0xFF800000> : vector<256xf32>
    %7 = vector.multi_reduction <maximumf>, %4, %cst [0] : vector<14x256xf32> to vector<256xf32>
    %8 = vector.shape_cast %7 : vector<256xf32> to vector<1x256xf32>
    %9 = vector.broadcast %8 : vector<1x256xf32> to vector<14x256xf32>
    %10 = arith.subf %4, %9 : vector<14x256xf32>
    %11 = math.exp %10 : vector<14x256xf32>
    %cst_6 = arith.constant dense<0.000000e+00> : vector<256xf32>
    %12 = vector.multi_reduction <add>, %11, %cst_6 [0] : vector<14x256xf32> to vector<256xf32>
    %13 = vector.shape_cast %12 : vector<256xf32> to vector<1x256xf32>
    %cst_7 = arith.constant 1.000000e+00 : f32
    %14 = vector.broadcast %cst_7 : f32 to vector<1x256xf32>
    %15 = arith.divf %14, %13 : vector<1x256xf32>
    %16 = tpu.iota {dimensions = array<i32: 0>} : vector<14x256xi32>
    %17 = vector.broadcast %8 : vector<1x256xf32> to vector<14x256xf32>
    %18 = arith.cmpf oeq, %4, %17 : vector<14x256xf32>
    %c14_i32 = arith.constant 14 : i32
    %19 = vector.broadcast %c14_i32 : i32 to vector<14x256xi32>
    %20 = arith.select %18, %16, %19 : vector<14x256xi1>, vector<14x256xi32>
    %cst_8 = arith.constant dense<2147483647> : vector<256xi32>
    %21 = vector.multi_reduction <minsi>, %20, %cst_8 [0] : vector<14x256xi32> to vector<256xi32>
    %22 = vector.shape_cast %21 : vector<256xi32> to vector<1x256xi32>
    %cst_9 = arith.constant dense<0xFF800000> : vector<256xf32>
    %23 = vector.multi_reduction <maximumf>, %6, %cst_9 [0] : vector<14x256xf32> to vector<256xf32>
    %24 = vector.shape_cast %23 : vector<256xf32> to vector<1x256xf32>
    %25 = vector.broadcast %24 : vector<1x256xf32> to vector<14x256xf32>
    %26 = arith.cmpf oeq, %6, %25 : vector<14x256xf32>
    %c14_i32_10 = arith.constant 14 : i32
    %27 = vector.broadcast %c14_i32_10 : i32 to vector<14x256xi32>
    %28 = arith.select %26, %16, %27 : vector<14x256xi1>, vector<14x256xi32>
    %cst_11 = arith.constant dense<2147483647> : vector<256xi32>
    %29 = vector.multi_reduction <minsi>, %28, %cst_11 [0] : vector<14x256xi32> to vector<256xi32>
    %30 = vector.shape_cast %29 : vector<256xi32> to vector<1x256xi32>
    %31 = arith.cmpi eq, %22, %30 : vector<1x256xi32>
    %32 = arith.extui %31 : vector<1x256xi1> to vector<1x256xi32>
    %33 = arith.sitofp %32 : vector<1x256xi32> to vector<1x256xf32>
    %cst_12 = arith.constant 1.500000e+01 : f32
    %34 = vector.broadcast %cst_12 : f32 to vector<1x256xf32>
    %35 = arith.mulf %15, %34 : vector<1x256xf32>
    %36 = math.floor %35 : vector<1x256xf32>
    %cst_13 = arith.constant 0.000000e+00 : f32
    %c14_i32_14 = arith.constant 14 : i32
    %37 = vector.broadcast %cst_13 : f32 to vector<1x256xf32>
    %38 = arith.maximumf %37, %36 : vector<1x256xf32>
    %39 = arith.sitofp %c14_i32_14 : i32 to f32
    %40 = vector.broadcast %39 : f32 to vector<1x256xf32>
    %41 = arith.minimumf %40, %38 : vector<1x256xf32>
    %42 = arith.fptosi %41 : vector<1x256xf32> to vector<1x256xi32>
    %43 = tpu.iota {dimensions = array<i32: 0>} : vector<16x256xi32>
    %44 = vector.broadcast %42 : vector<1x256xi32> to vector<16x256xi32>
    %45 = arith.cmpi eq, %43, %44 : vector<16x256xi32>
    %46 = arith.extui %45 : vector<16x256xi1> to vector<16x256xi32>
    %47 = arith.sitofp %46 : vector<16x256xi32> to vector<16x256xf32>
    %cst_15 = arith.constant dense<0.000000e+00> : vector<16xf32>
    %48 = vector.multi_reduction <add>, %47, %cst_15 [1] : vector<16x256xf32> to vector<16xf32>
    %49 = vector.shape_cast %48 : vector<16xf32> to vector<16x1xf32>
    %cst_16 = arith.constant 0.000000e+00 : f32
    %50 = vector.shape_cast %15 : vector<1x256xf32> to vector<1x256xf32>
    %51 = vector.broadcast %50 : vector<1x256xf32> to vector<16x256xf32>
    %52 = vector.broadcast %cst_16 : f32 to vector<16x256xf32>
    %53 = arith.select %45, %51, %52 : vector<16x256xi1>, vector<16x256xf32>
    %cst_17 = arith.constant dense<0.000000e+00> : vector<16xf32>
    %54 = vector.multi_reduction <add>, %53, %cst_17 [1] : vector<16x256xf32> to vector<16xf32>
    %55 = vector.shape_cast %54 : vector<16xf32> to vector<16x1xf32>
    %cst_18 = arith.constant 0.000000e+00 : f32
    %56 = vector.shape_cast %33 : vector<1x256xf32> to vector<1x256xf32>
    %57 = vector.broadcast %56 : vector<1x256xf32> to vector<16x256xf32>
    %58 = vector.broadcast %cst_18 : f32 to vector<16x256xf32>
    %59 = arith.select %45, %57, %58 : vector<16x256xi1>, vector<16x256xf32>
    %cst_19 = arith.constant dense<0.000000e+00> : vector<16xf32>
    %60 = vector.multi_reduction <add>, %59, %cst_19 [1] : vector<16x256xf32> to vector<16xf32>
    %61 = vector.shape_cast %60 : vector<16xf32> to vector<16x1xf32>
    %62 = tpu.iota {dimensions = array<i32: 1>} : vector<16x8xi32>
    %c0_i32_20 = arith.constant 0 : i32
    %63 = vector.broadcast %c0_i32_20 : i32 to vector<16x8xi32>
    %64 = arith.cmpi eq, %62, %63 : vector<16x8xi32>
    %cst_21 = arith.constant 0.000000e+00 : f32
    %65 = vector.shape_cast %49 : vector<16x1xf32> to vector<16x1xf32>
    %66 = vector.broadcast %65 : vector<16x1xf32> to vector<16x8xf32>
    %67 = vector.broadcast %cst_21 : f32 to vector<16x8xf32>
    %68 = arith.select %64, %66, %67 : vector<16x8xi1>, vector<16x8xf32>
    %c1_i32 = arith.constant 1 : i32
    %69 = vector.broadcast %c1_i32 : i32 to vector<16x8xi32>
    %70 = arith.cmpi eq, %62, %69 : vector<16x8xi32>
    %cst_22 = arith.constant 0.000000e+00 : f32
    %71 = vector.shape_cast %55 : vector<16x1xf32> to vector<16x1xf32>
    %72 = vector.broadcast %71 : vector<16x1xf32> to vector<16x8xf32>
    %73 = vector.broadcast %cst_22 : f32 to vector<16x8xf32>
    %74 = arith.select %70, %72, %73 : vector<16x8xi1>, vector<16x8xf32>
    %75 = arith.addf %68, %74 : vector<16x8xf32>
    %c2_i32 = arith.constant 2 : i32
    %76 = vector.broadcast %c2_i32 : i32 to vector<16x8xi32>
    %77 = arith.cmpi eq, %62, %76 : vector<16x8xi32>
    %cst_23 = arith.constant 0.000000e+00 : f32
    %78 = vector.shape_cast %61 : vector<16x1xf32> to vector<16x1xf32>
    %79 = vector.broadcast %78 : vector<16x1xf32> to vector<16x8xf32>
    %80 = vector.broadcast %cst_23 : f32 to vector<16x8xf32>
    %81 = arith.select %77, %79, %80 : vector<16x8xi1>, vector<16x8xf32>
    %82 = arith.addf %75, %81 : vector<16x8xf32>
    %c0_24 = arith.constant 0 : index
    %c0_25 = arith.constant 0 : index
    %c0_26 = arith.constant 0 : index
    %c0_27 = arith.constant 0 : index
    %83 = vector.load %arg5[%c0_24, %c0_25, %c0_26, %c0_27] : memref<1x1x16x8xf32, #tpu.memory_space<vmem>>, vector<1x1x16x8xf32>
    %84 = vector.shape_cast %82 : vector<16x8xf32> to vector<1x1x16x8xf32>
    %85 = arith.addf %83, %84 : vector<1x1x16x8xf32>
    %c0_28 = arith.constant 0 : index
    %c0_29 = arith.constant 0 : index
    %c0_30 = arith.constant 0 : index
    %c0_31 = arith.constant 0 : index
    %86 = vector.load %arg5[%c0_28, %c0_29, %c0_30, %c0_31] : memref<1x1x16x8xf32, #tpu.memory_space<vmem>>, vector<1x1x16x8xf32>
    tpu.vector_store %arg5[%c0_28, %c0_29, %c0_30, %c0_31], %85 {strides = array<i32>} : memref<1x1x16x8xf32, #tpu.memory_space<vmem>>, vector<1x1x16x8xf32>,
    return
  }
  func.func @transform_0(%arg0: i32, %arg1: i32, %arg2: i32) -> (i32, i32, i32) {
    %c1_i32 = arith.constant 1 : i32
    %0 = arith.muli %arg1, %c1_i32 : i32
    %1 = arith.addi %0, %arg2 : i32
    %c0_i32 = arith.constant 0 : i32
    %c0_i32_0 = arith.constant 0 : i32
    return %arg0, %c0_i32, %1 : i32, i32, i32
  }
  func.func @transform_1(%arg0: i32, %arg1: i32, %arg2: i32) -> (i32, i32, i32) {
    %c1_i32 = arith.constant 1 : i32
    %0 = arith.muli %arg1, %c1_i32 : i32
    %1 = arith.addi %0, %arg2 : i32
    %c0_i32 = arith.constant 0 : i32
    %c0_i32_0 = arith.constant 0 : i32
    return %arg0, %c0_i32, %1 : i32, i32, i32
  }
  func.func @transform_2(%arg0: i32, %arg1: i32, %arg2: i32) -> (i32, i32, i32, i32) {
    %c0_i32 = arith.constant 0 : i32
    %c0_i32_0 = arith.constant 0 : i32
    %c0_i32_1 = arith.constant 0 : i32
    return %arg0, %arg1, %c0_i32, %c0_i32_0 : i32, i32, i32, i32
  }
}

</mosaic_0001>

<bundles_post_ra>
// kernel: _ece_device.1
= control target key start
LH: loop header
LB: loop body
LE: loop exit
PB: predicated region body
PF: predicated region fallthrough
CT: control target
= control target key end

     0   :  { %s675_s9 = smov 0   ;;  %s677_s10 = smov 0   ;;  %s811_s0 = inlined_call_operand.vmem [shape: f32[2,14,256], index: 0, kind: input, shape index: {}]   ;;  %s812_s1 = inlined_call_operand.vmem [shape: f32[2,14,256], index: 1, kind: input, shape index: {}]   ;;  %s813_s2 = inlined_call_operand.vmem [shape: f32[2,1,16,8], index: 2, kind: output, shape index: {}]  }
   0x1   :  { %s679_s11 = smov 0  }
   0x2 LB: > { %s31_s12 = sadd.s32 1, %s653_s10  ;;  %p576_p0 = scmp.ge.s32.totalorder %s657_s11, 1  ;;  %s657_s11 = sphi %s679_s11, %s12_s11   ;;  %s653_s10 = sphi %s677_s10, %s823_s10   ;;  %s649_s9 = sphi %s675_s9, %s822_s9  }
   0x3   : > { %p33_p1 = scmp.ge.s32.totalorder %s31_s12, 2  ;;  %p165_p2 = scmp.lt.s32.totalorder %s657_s11, 3 }
   0x5   : > { %s825_s12 = smov (%p33_p1, %s31_s12), 0  ;;  %p166_p3 = pnand %p576_p0, %p165_p2 }
   0x6   : > { %p208_p4 = scmp.lt.s32.totalorder (!%p166_p3), %s649_s9, 1  ;;  %vm254_vm0 = vcmask (!%p166_p3), 1045504   ;;  %v303_v33 = vlaneseq (!%p166_p3) }
   0x7   : > { %169 = sbr.rel (%p166_p3) target bundleno = 249 (0xf9), region = 28 }
   0x8   : > { %v725_v42 = vshrl.u32 (!%p166_p3), %v303_v33, 7 }
   0xa   : > { %v728_v49 = vadd.s32 (!%p166_p3), 8, %v725_v42 }
   0xe   : > { %s827_s9 = smov (!%p208_p4, %s649_s9), 1 }
   0xf   : > { %s591_s13 = sshll.u32 %s827_s9, 5  ;;  %s593_s20 = sshll.u32 %s827_s9, 4 }
  0x10   : > { %s215_s16 = scalar_lea.vmem %s811_s0, %s591_s13  ;;  %s227_s19 = scalar_lea.vmem %s812_s1, %s591_s13 }
  0x11   : > { %v702_v0 = vld [vmem:[%s215_s16] sm:$0xff]  ;;  %v704_v1 = vld [vmem:[%s215_s16 + $0x8] sm:$0xff]  ;;  %v248_v2 = vld [vmem:[%s215_s16 + $0x10] sm:$0x3f]  ;;  %s238_s23 = scalar_lea.vmem %s813_s2, %s593_s20 }
  0x12   : > { %v706_v3 = vld [vmem:[%s215_s16 + $0x18] sm:$0x3f]  ;;  %v255_v4 = vsel %vm254_vm0, %v248_v2, -inf  ;;  %v709_v5 = vld [vmem:[%s227_s19] sm:$0xff]  ;;  %v711_v6 = vld [vmem:[%s227_s19 + $0x8] sm:$0xff] }
  0x13   : > { %v256_v7 = vmax.f32 %v702_v0, %v255_v4  ;;  %v263_v8 = vsel %vm254_vm0, %v706_v3, -inf  ;;  %v252_v9 = vld [vmem:[%s227_s19 + $0x10] sm:$0x3f]  ;;  %v253_v10 = vld [vmem:[%s227_s19 + $0x18] sm:$0x3f] }
  0x14   : > { %v264_v11 = vmax.f32 %v704_v1, %v263_v8  ;;  %v338_v12 = vsel %vm254_vm0, %v252_v9, -inf  ;;  %v346_v13 = vsel %vm254_vm0, %v253_v10, -inf }
  0x15   : > { %v257_v14 = vrot.slane %v256_v7, 4  ;;  %v339_v15 = vmax.f32 %v709_v5, %v338_v12  ;;  %v347_v16 = vmax.f32 %v711_v6, %v346_v13 }
  0x16   : > { %v265_v17 = vrot.slane %v264_v11, 4 }
  0x17   : > { %v258_v18 = vmax.f32 %v256_v7, %v257_v14  ;;  %v340_v19 = vrot.slane %v339_v15, 4  ;;  %v348_v20 = vrot.slane %v347_v16, 4 }
  0x18   : > { %v266_v21 = vmax.f32 %v264_v11, %v265_v17 }
  0x19   : > { %v259_v22 = vrot.slane %v258_v18, 2  ;;  %v341_v23 = vmax.f32 %v339_v15, %v340_v19  ;;  %v349_v24 = vmax.f32 %v347_v16, %v348_v20 }
  0x1a   : > { %v267_v25 = vrot.slane %v266_v21, 2 }
  0x1b   : > { %v260_v26 = vmax.f32 %v258_v18, %v259_v22  ;;  %v342_v27 = vrot.slane %v341_v23, 2  ;;  %v350_v28 = vrot.slane %v349_v24, 2 }
  0x1c   : > { %v268_v29 = vmax.f32 %v266_v21, %v267_v25 }
  0x1d   : > { %v261_v30 = vrot.slane %v260_v26, 1  ;;  %v343_v31 = vmax.f32 %v341_v23, %v342_v27  ;;  %v351_v35 = vmax.f32 %v349_v24, %v350_v28 }
  0x1e   : > { %v269_v32 = vrot.slane %v268_v29, 1 }
  0x1f   : > { %v262_v34 = vmax.f32 %v260_v26, %v261_v30  ;;  %v344_v39 = vrot.slane %v343_v31, 1  ;;  %v352_v45 = vrot.slane %v351_v35, 1 }
  0x20   : > { %v270_v36 = vmax.f32 %v268_v29, %v269_v32 }
  0x21   : > { %v271_v37 = vsub.f32 %v702_v0, %v262_v34  ;;  %v273_v38 = vsub.f32 %v248_v2, %v262_v34  ;;  %v345_v48 = vmax.f32 %v343_v31, %v344_v39  ;;  %vm308_vm1 = vcmp.eq.f32.partialorder %v248_v2, %v262_v34 }
  0x22   : > { %v272_v40 = vsub.f32 %v704_v1, %v270_v36  ;;  %v274_v41 = vsub.f32 %v706_v3, %v270_v36  ;;  %v353_v50 = vmax.f32 %v351_v35, %v352_v45  ;;  %vm306_vm3 = vcmp.eq.f32.partialorder %v702_v0, %v262_v34 }
  0x23   : > { %v275_v43 = vmul.f32 1.442695, %v271_v37  ;;  %v279_v44 = vmul.f32 1.442695, %v273_v38  ;;  %vm356_vm2 = vcmp.eq.f32.partialorder %v252_v9, %v345_v48  ;;  %vm309_vm4 = vcmp.eq.f32.partialorder %v706_v3, %v270_v36 }
  0x24   : > { %v277_v46 = vmul.f32 1.442695, %v272_v40  ;;  %v281_v47 = vmul.f32 1.442695, %v274_v41  ;;  %v312_v51 = vsel %vm308_vm1, %v728_v49, 14  ;;  %vm354_vm5 = vcmp.eq.f32.partialorder %v709_v5, %v345_v48 }
  0x25   : > { %623 = vpow2.f32 %v275_v43  ;;  %vm357_vm6 = vcmp.eq.f32.partialorder %v253_v10, %v353_v50  ;;  %v360_v52 = vsel %vm356_vm2, %v728_v49, 14  ;;  %vm307_vm7 = vcmp.eq.f32.partialorder %v704_v1, %v270_v36 }
  0x26   : > { %625 = vpow2.f32 %v277_v46  ;;  %v310_v53 = vsel %vm306_vm3, %v725_v42, 14  ;;  %v313_v54 = vsel %vm309_vm4, %v728_v49, 14  ;;  %v314_v55 = vsel %vm254_vm0, %v312_v51, 2147483647 }
  0x27   : > { %627 = vpow2.f32 %v279_v44  ;;  %vm355_vm8 = vcmp.eq.f32.partialorder %v711_v6, %v353_v50  ;;  %v358_v56 = vsel %vm354_vm5, %v725_v42, 14  ;;  %v361_v57 = vsel %vm357_vm6, %v728_v49, 14 }
  0x28   : > { %629 = vpow2.f32 %v281_v47  ;;  %v362_v58 = vsel %vm254_vm0, %v360_v52, 2147483647  ;;  %v311_v61 = vsel %vm307_vm7, %v725_v42, 14  ;;  %v326_v62 = vsel %vm254_vm0, %v313_v54, 2147483647 }
  0x29   : > { %vm315_vm9 = vcmp.lt.s32.totalorder %v310_v53, %v314_v55  ;;  %v359_v0 = vsel %vm355_vm8, %v725_v42, 14  ;;  %vm363_vm10 = vcmp.lt.s32.totalorder %v358_v56, %v362_v58  ;;  %v374_v1 = vsel %vm254_vm0, %v361_v57, 2147483647 }
  0x2a   : > { %vm327_vm11 = vcmp.lt.s32.totalorder %v311_v61, %v326_v62  ;;  %v316_v7 = vsel %vm315_vm9, %v310_v53, %v314_v55  ;;  %v364_v8 = vsel %vm363_vm10, %v358_v56, %v362_v58  ;;  %vm375_vm12 = vcmp.lt.s32.totalorder %v359_v0, %v374_v1 }
  0x2b   : > { %v328_v11 = vsel %vm327_vm11, %v311_v61, %v326_v62  ;;  %v317_v13 = vrot.slane %v316_v7, 4  ;;  %v365_v14 = vrot.slane %v364_v8, 4  ;;  %v376_v15 = vsel %vm375_vm12, %v359_v0, %v374_v1 }
  0x2c   : > { %v329_v18 = vrot.slane %v328_v11, 4  ;;  %v377_v20 = vrot.slane %v376_v15, 4 }
  0x2d   : > { %vm318_vm13 = vcmp.lt.s32.totalorder %v316_v7, %v317_v13  ;;  %vm366_vm14 = vcmp.lt.s32.totalorder %v364_v8, %v365_v14 }
  0x2e   : > { %vm330_vm15 = vcmp.lt.s32.totalorder %v328_v11, %v329_v18  ;;  %v319_v25 = vsel %vm318_vm13, %v316_v7, %v317_v13  ;;  %v367_v26 = vsel %vm366_vm14, %v364_v8, %v365_v14 }
  0x2f   : > { %v624_v59 = vpop.eup %623  ;;  %v331_v29 = vsel %vm330_vm15, %v328_v11, %v329_v18  ;;  %v320_v30 = vrot.slane %v319_v25, 2  ;;  %v368_v31 = vrot.slane %v367_v26, 2  ;;  %vm243_vm15 = vcmask 64512  }
  0x30   : > { %v626_v60 = vpop.eup %625  ;;  %v332_v34 = vrot.slane %v331_v29, 2 }
  0x31   : > { %v628_v63 = vpop.eup %627  ;;  %vm321_vm1 = vcmp.lt.s32.totalorder %v319_v25, %v320_v30  ;;  %vm369_vm2 = vcmp.lt.s32.totalorder %v367_v26, %v368_v31 }
  0x32   : > { %v630_v2 = vpop.eup %629  ;;  %v283_v3 = vsel %vm254_vm0, %v628_v63, 0.0  ;;  %vm333_vm3 = vcmp.lt.s32.totalorder %v331_v29, %v332_v34  ;;  %v322_v36 = vsel %vm321_vm1, %v319_v25, %v320_v30  ;;  %v370_v37 = vsel %vm369_vm2, %v367_v26, %v368_v31 }
  0x33   : > { %v284_v4 = vadd.f32 %v624_v59, %v283_v3  ;;  %v291_v5 = vsel %vm254_vm0, %v630_v2, 0.0  ;;  %vm378_vm0 = vcmp.lt.s32.totalorder %v376_v15, %v377_v20  ;;  %v334_v38 = vsel %vm333_vm3, %v331_v29, %v332_v34 }
  0x34   : > { %v292_v6 = vadd.f32 %v626_v60, %v291_v5  ;;  %v379_v32 = vsel %vm378_vm0, %v376_v15, %v377_v20  ;;  %v323_v40 = vrot.slane %v322_v36, 1  ;;  %v371_v41 = vrot.slane %v370_v37, 1 }
  0x35   : > { %v285_v9 = vrot.slane %v284_v4, 4  ;;  %v380_v35 = vrot.slane %v379_v32, 2  ;;  %v335_v47 = vrot.slane %v334_v38, 1  ;;  %v659_v2 = vmov 0.0  }
  0x36   : > { %v293_v10 = vrot.slane %v292_v6, 4  ;;  %vm324_vm5 = vcmp.lt.s32.totalorder %v322_v36, %v323_v40  ;;  %vm372_vm6 = vcmp.lt.s32.totalorder %v370_v37, %v371_v41  ;;  %245 = vst.msk [vmem:[%s238_s23 + $0x8] sm:$0xff] %vm243_vm15, %v659_v2  ;;  %244 = vst.msk [vmem:[%s238_s23] sm:$0xff] %vm243_vm15, %v659_v2 }
  0x37   : > { %v286_v12 = vadd.f32 %v285_v9, %v284_v4  ;;  %vm381_vm4 = vcmp.lt.s32.totalorder %v379_v32, %v380_v35  ;;  %vm336_vm7 = vcmp.lt.s32.totalorder %v334_v38, %v335_v47  ;;  %v325_v55 = vsel %vm324_vm5, %v322_v36, %v323_v40 }
  0x38   : > { %v294_v16 = vadd.f32 %v293_v10, %v292_v6  ;;  %v382_v43 = vsel %vm381_vm4, %v379_v32, %v380_v35  ;;  %v373_v56 = vsel %vm372_vm6, %v370_v37, %v371_v41  ;;  %v337_v60 = vsel %vm336_vm7, %v334_v38, %v335_v47 }
  0x39   : > { %v287_v17 = vrot.slane %v286_v12, 2  ;;  %v383_v50 = vrot.slane %v382_v43, 1  ;;  %vm386_vm9 = vcmp.eq.s32.totalorder %v325_v55, %v373_v56 }
  0x3a   : > { %v295_v19 = vrot.slane %v294_v16, 2  ;;  %v583_v3 = vsel %vm386_vm9, 1.0, %v659_v2 }
  0x3b   : > { %v288_v21 = vadd.f32 %v287_v17, %v286_v12  ;;  %vm384_vm8 = vcmp.lt.s32.totalorder %v382_v43, %v383_v50 }
  0x3c   : > { %v296_v22 = vadd.f32 %v295_v19, %v294_v16  ;;  %v385_v61 = vsel %vm384_vm8, %v382_v43, %v383_v50 }
  0x3d   : > { %v289_v23 = vrot.slane %v288_v21, 1  ;;  %vm387_vm12 = vcmp.eq.s32.totalorder %v337_v60, %v385_v61  ;;  %v456_v37 = vld [vmem:[%s238_s23 + $0x8] sm:$0xff] }
  0x3e   : > { %v297_v24 = vrot.slane %v296_v22, 1  ;;  %v584_v13 = vsel %vm387_vm12, 1.0, %v659_v2 }
  0x3f   : > { %v290_v27 = vadd.f32 %v289_v23, %v288_v21  ;;  %v441_v23 = vand.u32 127, %v303_v33 }
  0x40   : > { %v298_v28 = vadd.f32 %v297_v24, %v296_v22 }
  0x41   : > { %631 = vrcp.f32 %v290_v27  ;;  %vm445_vm0 = vcmp.eq.s32.totalorder %v441_v23, 1  ;;  %vm442_vm1 = vcmp.eq.s32.totalorder %v441_v23, 0  ;;  %vm450_vm2 = vcmp.eq.s32.totalorder %v441_v23, 2 }
  0x42   : > { %633 = vrcp.f32 %v298_v28 }
  0x4b   : > { %v632_v39 = vpop.eup %631 }
  0x4c   : > { %v634_v44 = vpop.eup %633  ;;  %v392_v45 = vmul.f32 15.0, %v632_v39 }
  0x4d   : > { %v393_v46 = vmul.f32 15.0, %v634_v44 }
  0x4e   : > { %v394_v48 = vfloor.f32 %v392_v45 }
  0x4f   : > { %v395_v51 = vfloor.f32 %v393_v46 }
  0x50   : > { %v396_v52 = vmax.f32 %v394_v48, 0.0 }
  0x51   : > { %v397_v53 = vmax.f32 %v395_v51, 0.0 }
  0x52   : > { %v398_v54 = vmin.f32 %v396_v52, 14.0 }
  0x53   : > { %v399_v57 = vmin.f32 %v397_v53, 14.0 }
  0x54   : > { %v594_v58 = vtrunc.f32 %v398_v54 }
  0x55   : > { %v596_v59 = vtrunc.f32 %v399_v57 }
  0x56   : > { %v595_v62 = vcvt.f32.s32 %v594_v58 }
  0x57   : > { %v597_v63 = vcvt.f32.s32 %v596_v59 }
  0x58   : > { %vm750_vm10 = vcmp.eq.s32.totalorder %v725_v42, %v595_v62  ;;  %vm755_vm11 = vcmp.eq.s32.totalorder %v728_v49, %v595_v62 }
  0x59   : > { %vm760_vm13 = vcmp.eq.s32.totalorder %v725_v42, %v597_v63  ;;  %v420_v5 = vsel %vm750_vm10, %v632_v39, 0.0  ;;  %v585_v6 = vsel %vm750_vm10, 1.0, %v659_v2  ;;  %vm769_vm14 = vcmp.eq.s32.totalorder %v728_v49, %v597_v63 }
  0x5a   : > { %v421_v8 = vsel %vm760_vm13, %v634_v44, 0.0  ;;  %v586_v42 = vsel %vm760_vm13, 1.0, %v659_v2  ;;  %v422_v9 = vsel %vm755_vm11, %v632_v39, 0.0  ;;  %v423_v10 = vsel %vm769_vm14, %v634_v44, 0.0  ;;  %v455_v39 = vld [vmem:[%s238_s23] sm:$0xff] }
  0x5b   : > { %v424_v11 = vadd.f32 %v421_v8, %v420_v5  ;;  %v414_v12 = vadd.f32 %v586_v42, %v585_v6  ;;  %v587_v49 = vsel %vm755_vm11, 1.0, %v659_v2  ;;  %v588_v14 = vsel %vm769_vm14, 1.0, %v659_v2 }
  0x5c   : > { %v427_v15 = vadd.f32 %v423_v10, %v422_v9  ;;  %v417_v16 = vadd.f32 %v588_v14, %v587_v49  ;;  %v432_v17 = vsel %vm755_vm11, %v583_v3, 0.0  ;;  %v433_v18 = vsel %vm769_vm14, %v584_v13, 0.0 }
  0x5d   : > { %425 = vadd.xlane.f32.xlu1 %v424_v11  ;;  %415 = vadd.xlane.f32.xlu0 %v414_v12  ;;  %v430_v19 = vsel %vm750_vm10, %v583_v3, 0.0  ;;  %v431_v20 = vsel %vm760_vm13, %v584_v13, 0.0  ;;  %v437_v21 = vadd.f32 %v433_v18, %v432_v17 }
  0x5e   : > { %v434_v22 = vadd.f32 %v431_v20, %v430_v19 }
  0x61   : > { %428 = vadd.xlane.f32.xlu1 %v427_v15  ;;  %418 = vadd.xlane.f32.xlu0 %v417_v16 }
  0x65   : > { %438 = vadd.xlane.f32.xlu1 %v437_v21  ;;  %435 = vadd.xlane.f32.xlu0 %v434_v22 }
  0xea   : > { %v426_v24 = vpop.xlane.xlu1 %425  ;;  %v416_v25 = vpop.xlane.xlu0 %415 }
  0xeb   : > { %v446_v28 = vsel %vm445_vm0, %v426_v24, 0.0  ;;  %v443_v29 = vsel %vm442_vm1, %v416_v25, 0.0 }
  0xec   : > { %v448_v32 = vadd.f32 %v446_v28, %v443_v29 }
  0xee   : > { %v429_v26 = vpop.xlane.xlu1 %428  ;;  %v419_v27 = vpop.xlane.xlu0 %418 }
  0xef   : > { %v447_v30 = vsel %vm445_vm0, %v429_v26, 0.0  ;;  %v444_v31 = vsel %vm442_vm1, %v419_v27, 0.0 }
  0xf0   : > { %v449_v34 = vadd.f32 %v447_v30, %v444_v31 }
  0xf2   : > { %v439_v35 = vpop.xlane.xlu1 %438  ;;  %v436_v36 = vpop.xlane.xlu0 %435 }
  0xf3   : > { %v452_v38 = vsel %vm450_vm2, %v439_v35, 0.0  ;;  %v451_v40 = vsel %vm450_vm2, %v436_v36, 0.0 }
  0xf4   : > { %v454_v33 = vadd.f32 %v452_v38, %v449_v34  ;;  %v453_v41 = vadd.f32 %v451_v40, %v448_v32 }
  0xf6   : > { %v458_v43 = vadd.f32 %v456_v37, %v454_v33  ;;  %v457_v44 = vadd.f32 %v455_v39, %v453_v41 }
  0xf8   : > { %461 = vst.msk [vmem:[%s238_s23 + $0x8] sm:$0xff] %vm243_vm15, %v458_v43  ;;  %460 = vst.msk [vmem:[%s238_s23] sm:$0xff] %vm243_vm15, %v457_v44 }
  0xf9 PF: > { %s12_s11 = sadd.s32 1, %s657_s11   ;;  %s822_s9 = smov %s653_s10 }
  0xfa   : > { %p9_p5 = scmp.ge.s32.totalorder %s12_s11, 4   ;;  %s823_s10 = smov %s825_s12 }
  0xfc   :  { %11 = sbr.rel (!%p9_p5) target bundleno = 2 (0x2), region = 65 }

</bundles_post_ra>
